<compile_context>
chip_gen: v5e
topology: v5e:2x2
jax: 0.10.0
libtpu: 0.0.40
codegen_flags: <defaults>
</compile_context>

<pallas_src>
import functools

import jax
import jax.numpy as jnp
from jax.experimental import pallas as pl
from jax.experimental.pallas import tpu as pltpu


def _cdiv(a, b):
    return -(-a // b)


def _round_up(x, m):
    return ((x + m - 1) // m) * m


def _baseline_dma_kernel(mean_ref, std_ref, mean_out, std_out,
                         mean_bc, std_bc, sems, *, tb, d, rem):
    """One grid step: (re)use the persistent (TB, D) broadcast scratch and DMA
    it to this step's row range of the HBM outputs."""
    i = pl.program_id(0)
    n = pl.num_programs(0)
    slot = i % 2

    # Build the broadcast source exactly once (grid axis is sequential).
    @pl.when(i == 0)
    def _init():
        mean_bc[...] = jnp.broadcast_to(mean_ref[...], (tb, d))
        std_bc[...] = jnp.broadcast_to(std_ref[...], (tb, d))

    start = i * tb
    if tb % 8 == 0:
        start = pl.multiple_of(start, 8)

    def _start(nrows, s):
        pltpu.make_async_copy(mean_bc.at[pl.ds(0, nrows), :],
                              mean_out.at[pl.ds(start, nrows), :],
                              sems.at[s, 0]).start()
        pltpu.make_async_copy(std_bc.at[pl.ds(0, nrows), :],
                              std_out.at[pl.ds(start, nrows), :],
                              sems.at[s, 1]).start()

    def _wait(nrows, s):
        # Dst slice only fixes the byte count for the semaphore wait.
        pltpu.make_async_copy(mean_bc.at[pl.ds(0, nrows), :],
                              mean_out.at[pl.ds(0, nrows), :],
                              sems.at[s, 0]).wait()
        pltpu.make_async_copy(std_bc.at[pl.ds(0, nrows), :],
                              std_out.at[pl.ds(0, nrows), :],
                              sems.at[s, 1]).wait()

    # Issue this step's copies (full-size blocks everywhere, except possibly a
    # smaller remainder on the last step).
    if rem == tb:
        _start(tb, slot)
    else:
        @pl.when(i < n - 1)
        def _start_full():
            _start(tb, slot)

        @pl.when(i == n - 1)
        def _start_tail():
            _start(rem, slot)

    # Keep one step's copies in flight: wait for the previous step's copies
    # (always full-size), and drain this step's own copies on the last step.
    @pl.when(i > 0)
    def _wait_prev():
        _wait(tb, 1 - slot)

    @pl.when(i == n - 1)
    def _wait_last():
        _wait(rem, slot)


def _scratch_rows_budget(d):
    """Max TB from a generation-gated single-buffered scratch budget."""
    try:
        vmem_cap = pltpu.get_tpu_info().vmem_capacity_bytes
    except Exception:
        vmem_cap = 64 << 20  # conservative (v7x-sized) fallback
    # Use at most 1/4 of physical VMEM for the two (TB, D) scratch buffers:
    # 16 MiB on v7x (64 MiB VMEM), 32 MiB on v5e/v6e (128 MiB VMEM).
    budget = min(vmem_cap // 4, 32 << 20)
    per_row_bytes = 2 * d * 4  # mean + std rows, single-buffered, f32
    tb = budget // max(per_row_bytes, 1)
    return max(8, (tb // 8) * 8)


def _pallas_repeat(mean2d, std2d, batch_size, *, block_rows=None):
    """Batch-tiled Pallas broadcast of (1, D) mean/std rows to (B, D)."""
    d = mean2d.shape[1]

    if block_rows is not None:
        tb = int(block_rows)
        # Guard: partial blocks want a sublane-friendly TB.
        if tb < batch_size and tb % 8 != 0:
            tb = _round_up(tb, 8)
        tb = max(1, tb)
    else:
        tb = _scratch_rows_budget(d)

    if batch_size <= tb:
        tb = batch_size  # single block
    elif block_rows is None:
        # Rebalance so the last block isn't nearly empty.
        steps = _cdiv(batch_size, tb)
        tb = _round_up(_cdiv(batch_size, steps), 8)

    n_steps = _cdiv(batch_size, tb)
    rem = batch_size - (n_steps - 1) * tb  # rows in the last step (static)

    kernel = functools.partial(_baseline_dma_kernel, tb=tb, d=d, rem=rem)

    scratch_bytes = 2 * tb * d * 4
    vmem_limit = int(max(scratch_bytes + (4 << 20), 16 << 20))

    out_shape = (
        jax.ShapeDtypeStruct((batch_size, d), jnp.float32),
        jax.ShapeDtypeStruct((batch_size, d), jnp.float32),
    )

    mean_rep, std_rep = pl.pallas_call(
        kernel,
        out_shape=out_shape,
        grid_spec=pltpu.PrefetchScalarGridSpec(
            num_scalar_prefetch=0,
            grid=(n_steps,),
            in_specs=[
                # Constant index_map -> params stay VMEM-resident across steps.
                pl.BlockSpec((1, d), lambda i: (0, 0)),
                pl.BlockSpec((1, d), lambda i: (0, 0)),
            ],
            out_specs=[
                # Raw HBM refs; written via manual async DMA from scratch.
                pl.BlockSpec(memory_space=pl.ANY),
                pl.BlockSpec(memory_space=pl.ANY),
            ],
            scratch_shapes=[
                pltpu.VMEM((tb, d), jnp.float32),       # mean broadcast source
                pltpu.VMEM((tb, d), jnp.float32),       # std broadcast source
                pltpu.SemaphoreType.DMA((2, 2)),        # 2 slots x (mean, std)
            ],
        ),
        compiler_params=pltpu.CompilerParams(
            # Sequential: persistent scratch is filled at step 0 and DMA slots
            # are cycled across steps.
            dimension_semantics=("arbitrary",),
            vmem_limit_bytes=vmem_limit,
        ),
        cost_estimate=pl.CostEstimate(
            flops=0,
            transcendentals=0,
            bytes_accessed=2 * batch_size * d * 4 + 2 * d * 4,
        ),
    )(mean2d, std2d)

    return mean_rep, std_rep


def baseline_forward(text, class_center, class_std, mean, std, *,
                     use_pallas=None, block_rows=None):
    """Pallas equivalent of Baseline.forward.

    text:         (B, text_input_size) — only the batch size is used.
    class_center: unused (signature parity with the PyTorch module).
    class_std:    unused.
    mean, std:    (image_size,) float32 parameters of the module.
    use_pallas:   None = auto (Pallas only when the output is large enough to
                  be HBM-write bound AND must be materialized); True/False to
                  force.  When the result feeds other ops inside the same jit,
                  prefer use_pallas=False so XLA fuses the broadcast.
    """
    del class_center, class_std  # unused, exactly as in the PyTorch forward
    batch_size = text.shape[0]
    image_size = mean.shape[0]

    mean2d = jnp.asarray(mean, jnp.float32).reshape(1, image_size)
    std2d = jnp.asarray(std, jnp.float32).reshape(1, image_size)

    if use_pallas is None:
        out_bytes = 2 * batch_size * image_size * 4
        use_pallas = out_bytes >= (1 << 20)

    if batch_size == 0 or not use_pallas:
        # Tiny / empty output: a Pallas launch is pure overhead; XLA fuses this.
        return (jnp.broadcast_to(mean2d, (batch_size, image_size)),
                jnp.broadcast_to(std2d, (batch_size, image_size)))

    return _pallas_repeat(mean2d, std2d, batch_size, block_rows=block_rows)


if __name__ == "__main__":
    # Module defaults: image_size=512, text_input_size=512.
    image_size = 512
    text_input_size = 512

    key = jax.random.PRNGKey(0)
    k_text, k_center, k_std, k_mean, k_sigma = jax.random.split(key, 5)

    def check(batch_size, mean, std, **kwargs):
        text = jax.random.normal(k_text, (batch_size, text_input_size), jnp.float32)
        class_center = jax.random.normal(k_center, (batch_size, image_size), jnp.float32)
        class_std = jax.random.normal(k_std, (batch_size, image_size), jnp.float32)

        mean_rep, std_rep = baseline_forward(
            text, class_center, class_std, mean, std, **kwargs)
        jax.block_until_ready((mean_rep, std_rep))

        expected_mean = jnp.tile(mean[None, :], (batch_size, 1))
        expected_std = jnp.tile(std[None, :], (batch_size, 1))
        assert mean_rep.shape == (batch_size, image_size)
        assert std_rep.shape == (batch_size, image_size)
        assert bool(jnp.all(mean_rep == expected_mean))
        assert bool(jnp.all(std_rep == expected_std))

    zeros = jnp.zeros((image_size,), jnp.float32)
    mean_p = jax.random.normal(k_mean, (image_size,), jnp.float32)
    std_p = jnp.abs(jax.random.normal(k_sigma, (image_size,), jnp.float32))

    # 1) Init state (zeros), tiny batch, single-block Pallas path (B=2 < 8).
    check(2, zeros, zeros, use_pallas=True)

    # 2) Post-update params (non-zero), tiny batch, single-block Pallas path.
    check(2, mean_p, std_p, use_pallas=True)

    # 3) Multi-step path with a partial last block (B=40, TB=16 -> grid=3,
    #    remainder=8): exercises the rem != TB DMA pipeline.
    check(40, mean_p, std_p, use_pallas=True, block_rows=16)

    # 4) Multi-step path, exactly divisible (B=48, TB=16 -> grid=3, rem==TB).
    check(48, mean_p, std_p, use_pallas=True, block_rows=16)

    # 5) Auto tile-size path forced through Pallas (single block, B << TB_max).
    check(64, mean_p, std_p, use_pallas=True)

    # 6) Auto-dispatch path (tiny output -> XLA broadcast, no Pallas launch).
    check(2, mean_p, std_p)

    print("KERNEL_OK")
</pallas_src>

<mosaic_0001>
module attributes {stable_mosaic.version = 11 : i64} {
  func.func @_baseline_dma_kernel(%arg0: i32, %arg1: memref<1x512xf32, #tpu.memory_space<vmem>>, %arg2: memref<1x512xf32, #tpu.memory_space<vmem>>, %arg3: memref<2x512xf32, #tpu.memory_space<any>>, %arg4: memref<2x512xf32, #tpu.memory_space<any>>, %arg5: memref<2x512xf32, #tpu.memory_space<vmem>>, %arg6: memref<2x512xf32, #tpu.memory_space<vmem>>, %arg7: memref<2x2x!tpu.dma_semaphore, #tpu.memory_space<semaphore_mem>>) attributes {dimension_semantics = [#tpu.dimension_semantics<arbitrary>], iteration_bounds = array<i64: 1>, scalar_prefetch = 0 : i64, scratch_operands = 3 : i64, tpu.core_type = #tpu.core_type<tc>, window_params = [{pipeline_mode = #tpu.pipeline_mode<synchronous>, transform_indices = @transform_0, window_bounds = array<i64: 1, 512>}, {pipeline_mode = #tpu.pipeline_mode<synchronous>, transform_indices = @transform_1, window_bounds = array<i64: 1, 512>}, {}, {}]} {
    %c2_i32 = arith.constant 2 : i32
    %c0_i32 = arith.constant 0 : i32
    %0 = arith.cmpi eq, %c2_i32, %c0_i32 : i32
    %c1_i32 = arith.constant 1 : i32
    %1 = arith.select %0, %c1_i32, %c2_i32 : i32
    %2 = arith.remsi %arg0, %1 : i32
    %c0_i32_0 = arith.constant 0 : i32
    %3 = arith.cmpi ne, %2, %c0_i32_0 : i32
    %c0_i32_1 = arith.constant 0 : i32
    %4 = arith.cmpi slt, %2, %c0_i32_1 : i32
    %c0_i32_2 = arith.constant 0 : i32
    %5 = arith.cmpi slt, %1, %c0_i32_2 : i32
    %6 = arith.xori %4, %5 : i1
    %7 = arith.andi %6, %3 : i1
    %8 = arith.addi %2, %1 : i32
    %9 = arith.select %7, %8, %2 : i32
    %c0_i32_3 = arith.constant 0 : i32
    %10 = arith.cmpi eq, %arg0, %c0_i32_3 : i32
    %11 = arith.extui %10 : i1 to i32
    %c0_i32_4 = arith.constant 0 : i32
    %12 = arith.cmpi ne, %11, %c0_i32_4 : i32
    scf.if %12 {
      %c0 = arith.constant 0 : index
      %c0_18 = arith.constant 0 : index
      %28 = vector.load %arg1[%c0, %c0_18] : memref<1x512xf32, #tpu.memory_space<vmem>>, vector<1x512xf32>
      %29 = vector.shape_cast %28 : vector<1x512xf32> to vector<1x512xf32>
      %30 = vector.broadcast %29 : vector<1x512xf32> to vector<2x512xf32>
      %c0_19 = arith.constant 0 : index
      %c0_20 = arith.constant 0 : index
      %31 = vector.load %arg5[%c0_19, %c0_20] : memref<2x512xf32, #tpu.memory_space<vmem>>, vector<2x512xf32>
      tpu.vector_store %arg5[%c0_19, %c0_20], %30 {strides = array<i32>} : memref<2x512xf32, #tpu.memory_space<vmem>>, vector<2x512xf32>,
      %c0_21 = arith.constant 0 : index
      %c0_22 = arith.constant 0 : index
      %32 = vector.load %arg2[%c0_21, %c0_22] : memref<1x512xf32, #tpu.memory_space<vmem>>, vector<1x512xf32>
      %33 = vector.shape_cast %32 : vector<1x512xf32> to vector<1x512xf32>
      %34 = vector.broadcast %33 : vector<1x512xf32> to vector<2x512xf32>
      %c0_23 = arith.constant 0 : index
      %c0_24 = arith.constant 0 : index
      %35 = vector.load %arg6[%c0_23, %c0_24] : memref<2x512xf32, #tpu.memory_space<vmem>>, vector<2x512xf32>
      tpu.vector_store %arg6[%c0_23, %c0_24], %34 {strides = array<i32>} : memref<2x512xf32, #tpu.memory_space<vmem>>, vector<2x512xf32>,
    } else {
    }
    %c2_i32_5 = arith.constant 2 : i32
    %13 = arith.muli %arg0, %c2_i32_5 : i32
    %c0_i32_6 = arith.constant 0 : i32
    %c0_i32_7 = arith.constant 0 : i32
    %c0_i32_8 = arith.constant 0 : i32
    %14 = tpu.memref_slice %arg5[%c0_i32_7, %c0_i32_8] : memref<2x512xf32, #tpu.memory_space<vmem>> -> memref<2x512xf32, #tpu.memory_space<vmem>>
    %c0_i32_9 = arith.constant 0 : i32
    %15 = tpu.memref_slice %arg3[%13, %c0_i32_9] : memref<2x512xf32, #tpu.memory_space<any>> -> memref<2x512xf32, #tpu.memory_space<any>>
    %16 = tpu.memref_slice %arg7[%9, %c0_i32_6] : memref<2x2x!tpu.dma_semaphore, #tpu.memory_space<semaphore_mem>> -> memref<1x1x!tpu.dma_semaphore, #tpu.memory_space<semaphore_mem>>
    %17 = tpu.memref_squeeze %16 : memref<1x1x!tpu.dma_semaphore, #tpu.memory_space<semaphore_mem>> -> memref<!tpu.dma_semaphore, #tpu.memory_space<semaphore_mem>>
    tpu.enqueue_dma source(%14 : memref<2x512xf32, #tpu.memory_space<vmem>>) target(%15 : memref<2x512xf32, #tpu.memory_space<any>>) target_semaphore(%17 : memref<!tpu.dma_semaphore, #tpu.memory_space<semaphore_mem>>)
    %c1_i32_10 = arith.constant 1 : i32
    %c0_i32_11 = arith.constant 0 : i32
    %c0_i32_12 = arith.constant 0 : i32
    %18 = tpu.memref_slice %arg6[%c0_i32_11, %c0_i32_12] : memref<2x512xf32, #tpu.memory_space<vmem>> -> memref<2x512xf32, #tpu.memory_space<vmem>>
    %c0_i32_13 = arith.constant 0 : i32
    %19 = tpu.memref_slice %arg4[%13, %c0_i32_13] : memref<2x512xf32, #tpu.memory_space<any>> -> memref<2x512xf32, #tpu.memory_space<any>>
    %20 = tpu.memref_slice %arg7[%9, %c1_i32_10] : memref<2x2x!tpu.dma_semaphore, #tpu.memory_space<semaphore_mem>> -> memref<1x1x!tpu.dma_semaphore, #tpu.memory_space<semaphore_mem>>
    %21 = tpu.memref_squeeze %20 : memref<1x1x!tpu.dma_semaphore, #tpu.memory_space<semaphore_mem>> -> memref<!tpu.dma_semaphore, #tpu.memory_space<semaphore_mem>>
    tpu.enqueue_dma source(%18 : memref<2x512xf32, #tpu.memory_space<vmem>>) target(%19 : memref<2x512xf32, #tpu.memory_space<any>>) target_semaphore(%21 : memref<!tpu.dma_semaphore, #tpu.memory_space<semaphore_mem>>)
    %c0_i32_14 = arith.constant 0 : i32
    %22 = arith.cmpi sgt, %arg0, %c0_i32_14 : i32
    %23 = arith.extui %22 : i1 to i32
    %c0_i32_15 = arith.constant 0 : i32
    %24 = arith.cmpi ne, %23, %c0_i32_15 : i32
    scf.if %24 {
      %c1_i32_18 = arith.constant 1 : i32
      %28 = arith.subi %c1_i32_18, %9 : i32
      %c0_i32_19 = arith.constant 0 : i32
      %c0_i32_20 = arith.constant 0 : i32
      %c0_i32_21 = arith.constant 0 : i32
      %29 = tpu.memref_slice %arg5[%c0_i32_20, %c0_i32_21] : memref<2x512xf32, #tpu.memory_space<vmem>> -> memref<2x512xf32, #tpu.memory_space<vmem>>
      %c0_i32_22 = arith.constant 0 : i32
      %c0_i32_23 = arith.constant 0 : i32
      %30 = tpu.memref_slice %arg3[%c0_i32_22, %c0_i32_23] : memref<2x512xf32, #tpu.memory_space<any>> -> memref<2x512xf32, #tpu.memory_space<any>>
      %31 = tpu.memref_slice %arg7[%28, %c0_i32_19] : memref<2x2x!tpu.dma_semaphore, #tpu.memory_space<semaphore_mem>> -> memref<1x1x!tpu.dma_semaphore, #tpu.memory_space<semaphore_mem>>
      %32 = tpu.memref_squeeze %31 : memref<1x1x!tpu.dma_semaphore, #tpu.memory_space<semaphore_mem>> -> memref<!tpu.dma_semaphore, #tpu.memory_space<semaphore_mem>>
      tpu.wait_dma2 semaphore(%32 : memref<!tpu.dma_semaphore, #tpu.memory_space<semaphore_mem>>) src(%29 : memref<2x512xf32, #tpu.memory_space<vmem>>) dst(%30 : memref<2x512xf32, #tpu.memory_space<any>>)
      %c1_i32_24 = arith.constant 1 : i32
      %c0_i32_25 = arith.constant 0 : i32
      %c0_i32_26 = arith.constant 0 : i32
      %33 = tpu.memref_slice %arg6[%c0_i32_25, %c0_i32_26] : memref<2x512xf32, #tpu.memory_space<vmem>> -> memref<2x512xf32, #tpu.memory_space<vmem>>
      %c0_i32_27 = arith.constant 0 : i32
      %c0_i32_28 = arith.constant 0 : i32
      %34 = tpu.memref_slice %arg4[%c0_i32_27, %c0_i32_28] : memref<2x512xf32, #tpu.memory_space<any>> -> memref<2x512xf32, #tpu.memory_space<any>>
      %35 = tpu.memref_slice %arg7[%28, %c1_i32_24] : memref<2x2x!tpu.dma_semaphore, #tpu.memory_space<semaphore_mem>> -> memref<1x1x!tpu.dma_semaphore, #tpu.memory_space<semaphore_mem>>
      %36 = tpu.memref_squeeze %35 : memref<1x1x!tpu.dma_semaphore, #tpu.memory_space<semaphore_mem>> -> memref<!tpu.dma_semaphore, #tpu.memory_space<semaphore_mem>>
      tpu.wait_dma2 semaphore(%36 : memref<!tpu.dma_semaphore, #tpu.memory_space<semaphore_mem>>) src(%33 : memref<2x512xf32, #tpu.memory_space<vmem>>) dst(%34 : memref<2x512xf32, #tpu.memory_space<any>>)
    } else {
    }
    %c0_i32_16 = arith.constant 0 : i32
    %25 = arith.cmpi eq, %arg0, %c0_i32_16 : i32
    %26 = arith.extui %25 : i1 to i32
    %c0_i32_17 = arith.constant 0 : i32
    %27 = arith.cmpi ne, %26, %c0_i32_17 : i32
    scf.if %27 {
      %c0_i32_18 = arith.constant 0 : i32
      %c0_i32_19 = arith.constant 0 : i32
      %c0_i32_20 = arith.constant 0 : i32
      %28 = tpu.memref_slice %arg5[%c0_i32_19, %c0_i32_20] : memref<2x512xf32, #tpu.memory_space<vmem>> -> memref<2x512xf32, #tpu.memory_space<vmem>>
      %c0_i32_21 = arith.constant 0 : i32
      %c0_i32_22 = arith.constant 0 : i32
      %29 = tpu.memref_slice %arg3[%c0_i32_21, %c0_i32_22] : memref<2x512xf32, #tpu.memory_space<any>> -> memref<2x512xf32, #tpu.memory_space<any>>
      %30 = tpu.memref_slice %arg7[%9, %c0_i32_18] : memref<2x2x!tpu.dma_semaphore, #tpu.memory_space<semaphore_mem>> -> memref<1x1x!tpu.dma_semaphore, #tpu.memory_space<semaphore_mem>>
      %31 = tpu.memref_squeeze %30 : memref<1x1x!tpu.dma_semaphore, #tpu.memory_space<semaphore_mem>> -> memref<!tpu.dma_semaphore, #tpu.memory_space<semaphore_mem>>
      tpu.wait_dma2 semaphore(%31 : memref<!tpu.dma_semaphore, #tpu.memory_space<semaphore_mem>>) src(%28 : memref<2x512xf32, #tpu.memory_space<vmem>>) dst(%29 : memref<2x512xf32, #tpu.memory_space<any>>)
      %c1_i32_23 = arith.constant 1 : i32
      %c0_i32_24 = arith.constant 0 : i32
      %c0_i32_25 = arith.constant 0 : i32
      %32 = tpu.memref_slice %arg6[%c0_i32_24, %c0_i32_25] : memref<2x512xf32, #tpu.memory_space<vmem>> -> memref<2x512xf32, #tpu.memory_space<vmem>>
      %c0_i32_26 = arith.constant 0 : i32
      %c0_i32_27 = arith.constant 0 : i32
      %33 = tpu.memref_slice %arg4[%c0_i32_26, %c0_i32_27] : memref<2x512xf32, #tpu.memory_space<any>> -> memref<2x512xf32, #tpu.memory_space<any>>
      %34 = tpu.memref_slice %arg7[%9, %c1_i32_23] : memref<2x2x!tpu.dma_semaphore, #tpu.memory_space<semaphore_mem>> -> memref<1x1x!tpu.dma_semaphore, #tpu.memory_space<semaphore_mem>>
      %35 = tpu.memref_squeeze %34 : memref<1x1x!tpu.dma_semaphore, #tpu.memory_space<semaphore_mem>> -> memref<!tpu.dma_semaphore, #tpu.memory_space<semaphore_mem>>
      tpu.wait_dma2 semaphore(%35 : memref<!tpu.dma_semaphore, #tpu.memory_space<semaphore_mem>>) src(%32 : memref<2x512xf32, #tpu.memory_space<vmem>>) dst(%33 : memref<2x512xf32, #tpu.memory_space<any>>)
    } else {
    }
    return
  }
  func.func @transform_0(%arg0: i32) -> (i32, i32) {
    %c0_i32 = arith.constant 0 : i32
    %c0_i32_0 = arith.constant 0 : i32
    %c0_i32_1 = arith.constant 0 : i32
    return %c0_i32, %c0_i32_0 : i32, i32
  }
  func.func @transform_1(%arg0: i32) -> (i32, i32) {
    %c0_i32 = arith.constant 0 : i32
    %c0_i32_0 = arith.constant 0 : i32
    %c0_i32_1 = arith.constant 0 : i32
    return %c0_i32, %c0_i32_0 : i32, i32
  }
}

</mosaic_0001>

<bundles_post_ra>
// kernel: tpu_custom_call.1
= control target key start
LH: loop header
LB: loop body
LE: loop exit
PB: predicated region body
PF: predicated region fallthrough
CT: control target
= control target key end

     0   :  { %9 = vsyncpa [#allocation6], 0  ;;  %s343_s0 = inlined_call_operand.hbm [shape: f32[1,512], index: 0, kind: input, shape index: {}]   ;;  %s344_s1 = inlined_call_operand.hbm [shape: f32[1,512], index: 1, kind: input, shape index: {}]   ;;  %s345_s2 = inlined_call_operand.hbm [shape: f32[2,512], index: 2, kind: output, shape index: {0}]   ;;  %s346_s3 = inlined_call_operand.hbm [shape: f32[2,512], index: 3, kind: output, shape index: {1}]  }
   0x1   :  { %s16_s14 = sshll.u32 %s343_s0, 4  ;;  %s17_s14 = int_to_ptr.hbm [resolvable:$true] %s16_s14 }
   0x2   :  { %10 = vsyncpa [#allocation8], 0  ;;  %s301_s15 = smov [#allocation5]   ;;  %s27_s19 = sshll.u32 %s344_s1, 4  ;;  %s28_s19 = int_to_ptr.hbm [resolvable:$true] %s27_s19 }
   0x3   :  { %s18_s16 = sshll.u32 %s301_s15, 4  ;;  %s302_s20 = smov [#allocation7]   ;;  %s19_s16 = int_to_ptr.vmem [resolvable:$true] %s18_s16 }
   0x4   :  { %21 = dma.hbm_to_vmem [thread:$0]  %s17_s14, 64, %s19_s16, [#allocation6]  }
   0x5   :  { %s29_s21 = sshll.u32 %s302_s20, 4  ;;  %s30_s21 = int_to_ptr.vmem [resolvable:$true] %s29_s21 }
   0x6   :  { %32 = dma.hbm_to_vmem [thread:$0]  %s28_s19, 64, %s30_s21, [#allocation8]  }
   0x7   :  { %293 = dma.done.wait [#allocation6], 64  }
   0x8   :  { %294 = vsyncadd [#allocation6], 4294967232 }
   0x9   :  { %295 = dma.done.wait [#allocation8], 64  }
   0xa   :  { %296 = vsyncadd [#allocation8], 4294967232  ;;  %vm62_vm0 = vcmask 1041408   ;;  %v53_v0 = vld [vmem:[#allocation5] sm:$0xf]  ;;  %vm64_vm1 = vcmask 1045508  }
   0xb   :  { %v70_v1 = vld [vmem:[#allocation7] sm:$0xf]  ;;  %v55_v2 = vperm.slane %v53_v0, 0  ;;  %v56_v3 = vperm.slane %v53_v0, 1  ;;  %v57_v4 = vperm.slane %v53_v0, 2  ;;  %v58_v5 = vperm.slane %v53_v0, 3 }
   0xc   :  { %v72_v6 = vperm.slane %v70_v1, 0  ;;  %v73_v7 = vperm.slane %v70_v1, 1  ;;  %v74_v8 = vperm.slane %v70_v1, 2  ;;  %v75_v9 = vperm.slane %v70_v1, 3  ;;  %s303_s0 = smov [#allocation2]   ;;  %s101_s24 = sshll.u32 %s345_s2, 4  ;;  %s102_s24 = int_to_ptr.hbm [resolvable:$true] %s101_s24 }
   0xd   :  { %s99_s1 = sshll.u32 %s303_s0, 4  ;;  %v59_v10 = vrot.slane %v56_v3, 6  ;;  %v60_v11 = vrot.slane %v57_v4, 4  ;;  %v61_v12 = vrot.slane %v58_v5, 2  ;;  %vm66_vm2 = vcmask 1043456   ;;  %s304_s25 = smov [#allocation3]   ;;  %s100_s1 = int_to_ptr.vmem [resolvable:$true] %s99_s1 }
   0xe   :  { %s116_s26 = sshll.u32 %s304_s25, 4  ;;  %s118_s29 = sshll.u32 %s346_s3, 4  ;;  %v76_v13 = vrot.slane %v73_v7, 6  ;;  %v77_v14 = vrot.slane %v74_v8, 4  ;;  %v78_v15 = vrot.slane %v75_v9, 2  ;;  %s117_s26 = int_to_ptr.vmem [resolvable:$true] %s116_s26  ;;  %s119_s29 = int_to_ptr.hbm [resolvable:$true] %s118_s29 }
   0xf   :  { %v63_v16 = vsel %vm62_vm0, %v55_v2, %v59_v10  ;;  %v65_v17 = vsel %vm64_vm1, %v60_v11, %v61_v12 }
  0x10   :  { %v67_v18 = vsel %vm66_vm2, %v63_v16, %v65_v17  ;;  %v79_v19 = vsel %vm62_vm0, %v72_v6, %v76_v13  ;;  %v80_v20 = vsel %vm64_vm1, %v77_v14, %v78_v15 }
  0x11   :  { %69 = vst [vmem:[#allocation2] sm:$0xff] %v67_v18  ;;  %v81_v21 = vsel %vm66_vm2, %v79_v19, %v80_v20 }
  0x12   :  { %83 = vst [vmem:[#allocation3] sm:$0xff] %v81_v21  ;;  %104 = dma.vmem_to_hbm [thread:$0]  %s100_s1, 128, %s102_s24, [#allocation4] }
  0x13   :  { %121 = dma.vmem_to_hbm [thread:$0]  %s117_s26, 128, %s119_s29, [#allocation4 + $0x1] }
  0x14   :  { %297 = dma.done.wait [#allocation4], 128 }
  0x15   :  { %298 = vsyncadd [#allocation4], 4294967168 }
  0x16   :  { %299 = dma.done.wait [#allocation4 + $0x1], 128 }
  0x17   :  { %300 = vsyncadd [#allocation4 + $0x1], 4294967168 }
  0x18   :  { %146 = vsyncpa [#allocation6], 1 }
  0x19   :  { %147 = vsyncpa [#allocation8], 1 }
  0x1a   :  { %148 = vsyncmov [#allocation4] }
  0x1d   :  { %s149_s2 = vpop.sfrf %148 }
  0x1e   :  { %p189_p0 = scmp.ne.s32.totalorder %s149_s2, 0 }
  0x20   :  { %153 = shalt.err (%p189_p0)  }
  0x21   :  { %155 = vsyncmov [#allocation4 + $0x1] }
  0x24   :  { %s156_s3 = vpop.sfrf %155 }
  0x25   :  { %p190_p1 = scmp.ne.s32.totalorder %s156_s3, 0 }
  0x27   :  { %160 = shalt.err (%p190_p1)  }
  0x28   :  { %162 = vsyncmov [#allocation4 + $0x2] }
  0x2b   :  { %s163_s30 = vpop.sfrf %162 }
  0x2c   :  { %p191_p2 = scmp.ne.s32.totalorder %s163_s30, 0 }
  0x2e   :  { %167 = shalt.err (%p191_p2)  }
  0x2f   :  { %169 = vsyncmov [#allocation4 + $0x3] }
  0x32   :  { %s170_s4 = vpop.sfrf %169 }
  0x33   :  { %p192_p3 = scmp.ne.s32.totalorder %s170_s4, 0 }
  0x35   :  { %174 = shalt.err (%p192_p3)  }

</bundles_post_ra>
